<compile_context>
chip_gen: v5e
topology: v5e:2x2
jax: 0.10.0
libtpu: 0.0.40
codegen_flags: <defaults>
</compile_context>

<pallas_src>
from functools import partial

import jax
import jax.numpy as jnp
from jax.experimental import pallas as pl
from jax.experimental.pallas import tpu as pltpu


def _linear_kernel_single_k(x_ref, w_ref, b_ref, o_ref):
    # x_ref: (tm, K)  w_ref: (K, tn)  b_ref: (1, tn) f32  o_ref: (tm, tn)
    acc = jnp.dot(x_ref[...], w_ref[...], preferred_element_type=jnp.float32)
    o_ref[...] = (acc + b_ref[...]).astype(o_ref.dtype)


def _linear_kernel_multi_k(x_ref, w_ref, b_ref, o_ref, acc_ref):
    # x_ref: (tm, tk)  w_ref: (tk, tn)  b_ref: (1, tn) f32  o_ref: (tm, tn)
    # acc_ref: (tm, tn) f32 scratch, persistent across the K grid axis.
    k = pl.program_id(2)

    @pl.when(k == 0)
    def _init():
        acc_ref[...] = jnp.zeros_like(acc_ref)

    acc_ref[...] += jnp.dot(
        x_ref[...], w_ref[...], preferred_element_type=jnp.float32
    )

    @pl.when(k == pl.num_programs(2) - 1)
    def _epilogue():
        o_ref[...] = (acc_ref[...] + b_ref[...]).astype(o_ref.dtype)


def _round_up(x, m):
    return ((x + m - 1) // m) * m


@partial(jax.jit, static_argnames=("tm", "tn", "tk", "compute_dtype"))
def linear_forward(x, w_t, b, *, tm=128, tn=128, tk=512, compute_dtype=None):
    """Compute x @ w_t + b with a tiled Pallas TPU matmul.

    x:   (B, D)   activations
    w_t: (D, OUT) weight stored pre-transposed (nn.Linear weight is (OUT, D))
    b:   (OUT,)   bias
    """
    B, D = x.shape
    OUT = w_t.shape[1]
    out_dtype = x.dtype

    # Optional bf16 inputs for v6e/v7x MXU throughput; accumulation stays f32.
    if compute_dtype is not None:
        x = x.astype(compute_dtype)
        w_t = w_t.astype(compute_dtype)

    # Effective tile sizes: hardware-aligned, never bigger than the problem.
    tm_e = min(tm, _round_up(B, 8))      # sublane axis of x / output
    tk_e = min(tk, _round_up(D, 128))    # lane axis of x, sublane axis of w_t
    tn_e = min(tn, _round_up(OUT, 128))  # lane axis of w_t / output: lane-dense

    # Pad operands to whole tiles (zero padding keeps the matmul exact).
    Bp, Dp, Np = _round_up(B, tm_e), _round_up(D, tk_e), _round_up(OUT, tn_e)
    if (Bp, Dp) != (B, D):
        x = jnp.pad(x, ((0, Bp - B), (0, Dp - D)))
    if (Dp, Np) != (D, OUT):
        w_t = jnp.pad(w_t, ((0, Dp - D), (0, Np - OUT)))
    if Np != OUT:
        b = jnp.pad(b, (0, Np - OUT))
    b2d = b.reshape(1, Np).astype(jnp.float32)

    nm, nn, nk = Bp // tm_e, Np // tn_e, Dp // tk_e

    elt = jnp.dtype(x.dtype).itemsize
    cost = pl.CostEstimate(
        flops=2 * Bp * Dp * Np,
        transcendentals=0,
        bytes_accessed=(Bp * Dp + Dp * Np) * elt
        + Np * 4
        + Bp * Np * jnp.dtype(out_dtype).itemsize,
    )

    if nk == 1:
        # Fast path: whole contraction dim fits in one tile -> no accumulator,
        # no reduction axis, fully parallel 2-D grid.
        out_padded = pl.pallas_call(
            _linear_kernel_single_k,
            out_shape=jax.ShapeDtypeStruct((Bp, Np), out_dtype),
            grid=(nm, nn),
            in_specs=[
                pl.BlockSpec((tm_e, Dp), lambda i, j: (i, 0)),
                pl.BlockSpec((Dp, tn_e), lambda i, j: (0, j)),
                pl.BlockSpec((1, tn_e), lambda i, j: (0, j)),
            ],
            out_specs=pl.BlockSpec((tm_e, tn_e), lambda i, j: (i, j)),
            compiler_params=pltpu.CompilerParams(
                dimension_semantics=("parallel", "parallel"),
            ),
            cost_estimate=cost,
        )(x, w_t, b2d)
    else:
        out_padded = pl.pallas_call(
            _linear_kernel_multi_k,
            out_shape=jax.ShapeDtypeStruct((Bp, Np), out_dtype),
            grid=(nm, nn, nk),  # reduction (K) axis last
            in_specs=[
                pl.BlockSpec((tm_e, tk_e), lambda i, j, k: (i, k)),
                pl.BlockSpec((tk_e, tn_e), lambda i, j, k: (k, j)),
                pl.BlockSpec((1, tn_e), lambda i, j, k: (0, j)),
            ],
            out_specs=pl.BlockSpec((tm_e, tn_e), lambda i, j, k: (i, j)),
            scratch_shapes=[pltpu.VMEM((tm_e, tn_e), jnp.float32)],
            compiler_params=pltpu.CompilerParams(
                dimension_semantics=("parallel", "parallel", "arbitrary"),
            ),
            cost_estimate=cost,
        )(x, w_t, b2d)

    # Strip the padding back off.
    return out_padded[:B, :OUT]


def xavier_uniform(key, fan_out, fan_in, dtype=jnp.float32):
    # matches torch.nn.init.xavier_uniform_ for a (fan_out, fan_in) weight
    limit = (6.0 / (fan_in + fan_out)) ** 0.5
    return jax.random.uniform(key, (fan_out, fan_in), dtype, -limit, limit)


if __name__ == "__main__":
    key = jax.random.PRNGKey(0)
    k_w, k_b, k_x, k_w2, k_b2, k_x2 = jax.random.split(key, 6)

    # --- 1) The LinearModel spec shapes: d=10, out=1, small batch. -----------
    # NOTE: at this toy size a standalone Pallas kernel is pure launch/DMA
    # overhead and in production this layer should simply be fused by XLA; it
    # is exercised here for correctness, the tiling pays off at real sizes.
    d, out, batch = 10, 1, 8

    weight = xavier_uniform(k_w, out, d)              # (out, d), PyTorch layout
    bound = 1.0 / (d ** 0.5)                          # nn.Linear default bias init
    bias = jax.random.uniform(k_b, (out,), jnp.float32, -bound, bound)
    w_t = weight.T                                    # stored pre-transposed (D, OUT)

    x = jax.random.normal(k_x, (batch, d), jnp.float32)

    y = linear_forward(x, w_t, bias)
    jax.block_until_ready(y)
    y_ref = x @ weight.T + bias
    assert y.shape == (batch, out)
    assert jnp.allclose(y, y_ref, atol=1e-5, rtol=1e-5), "small-shape mismatch"

    # --- 2) A multi-tile shape exercising the (i, j, k) grid + accumulator. --
    B2, D2, OUT2 = 256, 640, 384      # grid = (2, 3, 2) with tm=tn=128, tk=512
    weight2 = xavier_uniform(k_w2, OUT2, D2)
    bias2 = jax.random.uniform(
        k_b2, (OUT2,), jnp.float32, -1.0 / (D2 ** 0.5), 1.0 / (D2 ** 0.5)
    )
    x2 = jax.random.normal(k_x2, (B2, D2), jnp.float32)
    w_t2 = weight2.T

    y2 = linear_forward(x2, w_t2, bias2)
    jax.block_until_ready(y2)
    y2_ref = jnp.dot(x2, w_t2, precision=jax.lax.Precision.HIGHEST) + bias2
    assert y2.shape == (B2, OUT2)
    assert jnp.allclose(y2, y2_ref, atol=5e-3, rtol=5e-3), "tiled-shape mismatch"

    print("KERNEL_OK")
</pallas_src>

<mosaic_0001>
module attributes {stable_mosaic.version = 11 : i64} {
  func.func @_linear_kernel_single_k(%arg0: i32, %arg1: i32, %arg2: memref<8x128xf32, #tpu.memory_space<vmem>>, %arg3: memref<128x128xf32, #tpu.memory_space<vmem>>, %arg4: memref<1x128xf32, #tpu.memory_space<vmem>>, %arg5: memref<8x128xf32, #tpu.memory_space<vmem>>) attributes {dimension_semantics = [#tpu.dimension_semantics<parallel>, #tpu.dimension_semantics<parallel>], iteration_bounds = array<i64: 1, 1>, scalar_prefetch = 0 : i64, scratch_operands = 0 : i64, tpu.core_type = #tpu.core_type<tc>, window_params = [{transform_indices = @transform_0, window_bounds = array<i64: 8, 128>}, {transform_indices = @transform_1, window_bounds = array<i64: 128, 128>}, {transform_indices = @transform_2, window_bounds = array<i64: 1, 128>}, {transform_indices = @transform_3, window_bounds = array<i64: 8, 128>}]} {
    %c0 = arith.constant 0 : index
    %c0_0 = arith.constant 0 : index
    %0 = vector.load %arg2[%c0, %c0_0] : memref<8x128xf32, #tpu.memory_space<vmem>>, vector<8x128xf32>
    %c0_1 = arith.constant 0 : index
    %c0_2 = arith.constant 0 : index
    %1 = vector.load %arg3[%c0_1, %c0_2] : memref<128x128xf32, #tpu.memory_space<vmem>>, vector<128x128xf32>
    %cst = arith.constant dense<0.000000e+00> : vector<8x128xf32>
    %2 = tpu.matmul %0, %1, %cst {dimension_numbers = #tpu.dot_dimension_numbers<[1], [0], [0], [1], [0, 0, 1, 1], [], []>} : vector<8x128xf32>, vector<128x128xf32>, vector<8x128xf32> -> vector<8x128xf32>
    %c0_3 = arith.constant 0 : index
    %c0_4 = arith.constant 0 : index
    %3 = vector.load %arg4[%c0_3, %c0_4] : memref<1x128xf32, #tpu.memory_space<vmem>>, vector<1x128xf32>
    %4 = vector.broadcast %3 : vector<1x128xf32> to vector<8x128xf32>
    %5 = arith.addf %2, %4 : vector<8x128xf32>
    %c0_5 = arith.constant 0 : index
    %c0_6 = arith.constant 0 : index
    %6 = vector.load %arg5[%c0_5, %c0_6] : memref<8x128xf32, #tpu.memory_space<vmem>>, vector<8x128xf32>
    tpu.vector_store %arg5[%c0_5, %c0_6], %5 {strides = array<i32>} : memref<8x128xf32, #tpu.memory_space<vmem>>, vector<8x128xf32>,
    return
  }
  func.func @transform_0(%arg0: i32, %arg1: i32) -> (i32, i32) {
    %c0_i32 = arith.constant 0 : i32
    %c0_i32_0 = arith.constant 0 : i32
    return %arg0, %c0_i32 : i32, i32
  }
  func.func @transform_1(%arg0: i32, %arg1: i32) -> (i32, i32) {
    %c0_i32 = arith.constant 0 : i32
    %c0_i32_0 = arith.constant 0 : i32
    return %c0_i32, %arg1 : i32, i32
  }
  func.func @transform_2(%arg0: i32, %arg1: i32) -> (i32, i32) {
    %c0_i32 = arith.constant 0 : i32
    %c0_i32_0 = arith.constant 0 : i32
    return %c0_i32, %arg1 : i32, i32
  }
  func.func @transform_3(%arg0: i32, %arg1: i32) -> (i32, i32) {
    %c0_i32 = arith.constant 0 : i32
    return %arg0, %arg1 : i32, i32
  }
}

</mosaic_0001>

<bundles_post_ra>
// kernel: linear_forward.1
= control target key start
LH: loop header
LB: loop body
LE: loop exit
PB: predicated region body
PF: predicated region fallthrough
CT: control target
= control target key end

     0   :  { %s138_s1 = inlined_call_operand.vmem [shape: f32[128,128], index: 1, kind: input, shape index: {}]   ;;  %s139_s2 = inlined_call_operand.vmem [shape: f32[1,128], index: 2, kind: input, shape index: {}]   ;;  %s140_s0 = inlined_call_operand.vmem [shape: f32[8,128], index: 0, kind: input, shape index: {}]   ;;  %s141_s3 = inlined_call_operand.vmem [shape: f32[8,128], index: 3, kind: output, shape index: {}]  }
   0x1   :  { %v30_v0 = vld [vmem:[%s138_s1 + $0x78] sm:$0xff]  ;;  %v29_v1 = vld [vmem:[%s138_s1 + $0x70] sm:$0xff]  ;;  %v28_v2 = vld [vmem:[%s138_s1 + $0x68] sm:$0xff] }
   0x2   :  { %35 = vmatpush.msra.mxu0 %v30_v0  ;;  %v27_v3 = vld [vmem:[%s138_s1 + $0x60] sm:$0xff]  ;;  %v26_v4 = vld [vmem:[%s138_s1 + $0x58] sm:$0xff]  ;;  %v25_v5 = vld [vmem:[%s138_s1 + $0x50] sm:$0xff] }
   0x3   :  { %v24_v6 = vld [vmem:[%s138_s1 + $0x48] sm:$0xff]  ;;  %v23_v7 = vld [vmem:[%s138_s1 + $0x40] sm:$0xff]  ;;  %v22_v8 = vld [vmem:[%s138_s1 + $0x38] sm:$0xff] }
   0x4   :  { %36 = vmatpush.msra.mxu0 %v29_v1  ;;  %v21_v9 = vld [vmem:[%s138_s1 + $0x30] sm:$0xff]  ;;  %v20_v10 = vld [vmem:[%s138_s1 + $0x28] sm:$0xff]  ;;  %v19_v11 = vld [vmem:[%s138_s1 + $0x20] sm:$0xff] }
   0x5   :  { %v18_v12 = vld [vmem:[%s138_s1 + $0x18] sm:$0xff]  ;;  %v17_v13 = vld [vmem:[%s138_s1 + $0x10] sm:$0xff]  ;;  %v16_v14 = vld [vmem:[%s138_s1 + $0x8] sm:$0xff] }
   0x6   :  { %37 = vmatpush.msra.mxu0 %v28_v2  ;;  %v15_v15 = vld [vmem:[%s138_s1] sm:$0xff] }
   0x7   :  { %v14_v16 = vld [vmem:[%s140_s0] sm:$0xff] }
   0x8   :  { %38 = vmatpush.msra.mxu0 %v27_v3  ;;  %v60_v17 = vld [vmem:[%s139_s2] ss:$0 sm:$0xff] }
   0xa   :  { %39 = vmatpush.msra.mxu0 %v26_v4 }
   0xc   :  { %40 = vmatpush.msra.mxu0 %v25_v5 }
   0xe   :  { %41 = vmatpush.msra.mxu0 %v24_v6 }
  0x10   :  { %42 = vmatpush.msra.mxu0 %v23_v7 }
  0x12   :  { %43 = vmatpush.msra.mxu0 %v22_v8 }
  0x14   :  { %44 = vmatpush.msra.mxu0 %v21_v9 }
  0x16   :  { %45 = vmatpush.msra.mxu0 %v20_v10 }
  0x18   :  { %46 = vmatpush.msra.mxu0 %v19_v11 }
  0x1a   :  { %47 = vmatpush.msra.mxu0 %v18_v12 }
  0x1c   :  { %48 = vmatpush.msra.mxu0 %v17_v13 }
  0x1e   :  { %49 = vmatpush.msra.mxu0 %v16_v14 }
  0x20   :  { %50 = vmatpush.msra.mxu0 %v15_v15 }
  0x21   :  { %51 = vmatmul.f32.vlgmr.msra.gmra.mxu0 %v14_v16 }
  0x9e   :  { %v52_v18 = vpop.f32.mrf.mxu0 }
  0x9f   :  { %v53_v19 = vadd.f32 %v60_v17, %v52_v18 }
  0xa1   :  { %55 = vst [vmem:[%s141_s3] sm:$0xff] %v53_v19 }

</bundles_post_ra>
